<compile_context>
chip_gen: v6e
topology: v6e:2x2x1
jax: 0.10.0
libtpu: 0.0.40
codegen_flags: <defaults>
</compile_context>

<pallas_src>
import math

import jax
import jax.numpy as jnp
from jax.experimental import pallas as pl
from jax.experimental.pallas import tpu as pltpu


def _pooler_kernel(x_ref, w_ref, b_ref, o_ref):
    # x_ref: (TM, H_in)   first-token activations for this batch tile
    # w_ref: (H_in, TN)   pre-transposed weight slab ([in_features, out_features])
    # b_ref: (1,  TN)     bias slab
    # o_ref: (TM, TN)
    y = jnp.dot(x_ref[...], w_ref[...], preferred_element_type=jnp.float32)
    y = y + b_ref[...].astype(jnp.float32)
    o_ref[...] = jnp.tanh(y).astype(o_ref.dtype)


def _pick_tile(dim, candidates):
    for c in candidates:
        if dim % c == 0:
            return c
    return dim  # fall back to the full (untiled) dimension


@jax.jit
def bert_pooler(hidden_states, weight_t, bias):
    """BertPooler forward.

    hidden_states: (B, S, H)
    weight_t:      (H, H)  weight pre-transposed ONCE at param-init/load time to
                   [in_features, out_features] (i.e. PyTorch W[out, in] stored as W.T)
    bias:          (H,)

    Returns: (B, H) = tanh(hidden_states[:, 0] @ weight_t + bias)
    """
    B, S, H = hidden_states.shape
    H_in, H_out = weight_t.shape
    assert H_in == H and H_out == H, "pooler is hidden->hidden"

    # Tile sizes: batch tile multiple of 8 (sublane) when possible, output-feature
    # tile a multiple of 128 (lane-dense stores) when possible.
    TM = _pick_tile(B, (128, 64, 32, 16, 8))
    TN = _pick_tile(H_out, (256, 128))

    bias2d = bias.reshape(1, H_out)

    # Fuse the first-token slice into the BlockSpec: view (B, S, H) as (B, S*H)
    # (free, metadata-only reshape for a contiguous array). Block column 0 of width
    # H along the flattened axis is exactly hidden_states[:, 0, :]. This needs the
    # block's last dim (H) to satisfy the lane constraint when it is a partial row.
    if (H % 128 == 0) or (S == 1):
        x_in = hidden_states.reshape(B, S * H)
    else:
        # Fallback for odd hidden sizes: slice in the wrapper (block == full row).
        x_in = hidden_states[:, 0]
    x_spec = pl.BlockSpec((TM, H), lambda i, j: (i, 0))

    itemsize = jnp.dtype(hidden_states.dtype).itemsize
    cost = pl.CostEstimate(
        flops=2 * B * H_in * H_out,
        transcendentals=B * H_out,
        bytes_accessed=(H_in * H_out * jnp.dtype(weight_t.dtype).itemsize  # weight stream
                        + 2 * B * H * itemsize                              # x in + out
                        + H_out * jnp.dtype(bias.dtype).itemsize),
    )

    grid = (pl.cdiv(B, TM), pl.cdiv(H_out, TN))

    out = pl.pallas_call(
        _pooler_kernel,
        out_shape=jax.ShapeDtypeStruct((B, H_out), hidden_states.dtype),
        grid=grid,
        in_specs=[
            x_spec,                                              # (TM, H)   @ (i, 0)
            pl.BlockSpec((H_in, TN), lambda i, j: (0, j)),       # (H, TN)   @ (0, j)
            pl.BlockSpec((1, TN), lambda i, j: (0, j)),          # (1, TN)   @ (0, j)
        ],
        out_specs=pl.BlockSpec((TM, TN), lambda i, j: (i, j)),   # (TM, TN)  @ (i, j)
        compiler_params=pltpu.CompilerParams(
            dimension_semantics=("parallel", "parallel"),
        ),
        cost_estimate=cost,
    )(x_in, weight_t, bias2d)
    return out


def init_params(key, hidden_size, dtype=jnp.float32):
    """Deterministic init mirroring kaiming_uniform_(a=sqrt(5)) + uniform bias bound.

    Returns the weight ALREADY transposed to [in_features, out_features] (done once
    here, never per call), plus the bias.
    """
    kw, kb = jax.random.split(key)
    fan_in = hidden_size
    gain = math.sqrt(2.0 / (1.0 + 5.0))                   # a = sqrt(5)
    w_bound = gain * math.sqrt(3.0 / fan_in)
    weight_pt = jax.random.uniform(kw, (hidden_size, hidden_size),   # PyTorch [out, in]
                                   minval=-w_bound, maxval=w_bound, dtype=dtype)
    weight_t = jnp.asarray(weight_pt.T)                   # stored [in, out], one-time cost
    b_bound = 1.0 / math.sqrt(fan_in)
    bias = jax.random.uniform(kb, (hidden_size,),
                              minval=-b_bound, maxval=b_bound, dtype=dtype)
    return weight_t, bias


if __name__ == "__main__":
    key = jax.random.PRNGKey(0)
    k_x, k_p = jax.random.split(key)

    # Small but tiling-exercising shapes: 2 batch tiles x 2 output-feature tiles.
    B, S, H = 16, 8, 512
    hidden_states = jax.random.normal(k_x, (B, S, H), dtype=jnp.float32)
    weight_t, bias = init_params(k_p, H)

    pooled = bert_pooler(hidden_states, weight_t, bias)
    jax.block_until_ready(pooled)

    # Reference check in plain JAX (high-precision matmul).
    first_token = hidden_states[:, 0]
    ref = jnp.tanh(
        jnp.dot(first_token, weight_t, precision=jax.lax.Precision.HIGHEST) + bias
    )
    assert pooled.shape == (B, H)
    assert bool(jnp.allclose(pooled, ref, atol=1e-3, rtol=1e-3)), \
        f"max abs err = {float(jnp.max(jnp.abs(pooled - ref)))}"

    print("KERNEL_OK")
</pallas_src>

<mosaic_0001>
module attributes {stable_mosaic.version = 11 : i64} {
  func.func @_pooler_kernel(%arg0: i32, %arg1: i32, %arg2: memref<16x512xf32, #tpu.memory_space<vmem>>, %arg3: memref<512x256xf32, #tpu.memory_space<vmem>>, %arg4: memref<1x256xf32, #tpu.memory_space<vmem>>, %arg5: memref<16x256xf32, #tpu.memory_space<vmem>>) attributes {dimension_semantics = [#tpu.dimension_semantics<parallel>, #tpu.dimension_semantics<parallel>], iteration_bounds = array<i64: 1, 2>, scalar_prefetch = 0 : i64, scratch_operands = 0 : i64, tpu.core_type = #tpu.core_type<tc>, window_params = [{transform_indices = @transform_0, window_bounds = array<i64: 16, 512>}, {transform_indices = @transform_1, window_bounds = array<i64: 512, 256>}, {transform_indices = @transform_2, window_bounds = array<i64: 1, 256>}, {transform_indices = @transform_3, window_bounds = array<i64: 16, 256>}]} {
    %c0 = arith.constant 0 : index
    %c0_0 = arith.constant 0 : index
    %0 = vector.load %arg2[%c0, %c0_0] : memref<16x512xf32, #tpu.memory_space<vmem>>, vector<16x512xf32>
    %c0_1 = arith.constant 0 : index
    %c0_2 = arith.constant 0 : index
    %1 = vector.load %arg3[%c0_1, %c0_2] : memref<512x256xf32, #tpu.memory_space<vmem>>, vector<512x256xf32>
    %cst = arith.constant dense<0.000000e+00> : vector<16x256xf32>
    %2 = tpu.matmul %0, %1, %cst {dimension_numbers = #tpu.dot_dimension_numbers<[1], [0], [0], [1], [0, 0, 1, 1], [], []>} : vector<16x512xf32>, vector<512x256xf32>, vector<16x256xf32> -> vector<16x256xf32>
    %c0_3 = arith.constant 0 : index
    %c0_4 = arith.constant 0 : index
    %3 = vector.load %arg4[%c0_3, %c0_4] : memref<1x256xf32, #tpu.memory_space<vmem>>, vector<1x256xf32>
    %4 = vector.broadcast %3 : vector<1x256xf32> to vector<16x256xf32>
    %5 = arith.addf %2, %4 : vector<16x256xf32>
    %6 = math.tanh %5 : vector<16x256xf32>
    %c0_5 = arith.constant 0 : index
    %c0_6 = arith.constant 0 : index
    %7 = vector.load %arg5[%c0_5, %c0_6] : memref<16x256xf32, #tpu.memory_space<vmem>>, vector<16x256xf32>
    tpu.vector_store %arg5[%c0_5, %c0_6], %6 {strides = array<i32>} : memref<16x256xf32, #tpu.memory_space<vmem>>, vector<16x256xf32>,
    return
  }
  func.func @transform_0(%arg0: i32, %arg1: i32) -> (i32, i32) {
    %c0_i32 = arith.constant 0 : i32
    %c0_i32_0 = arith.constant 0 : i32
    return %arg0, %c0_i32 : i32, i32
  }
  func.func @transform_1(%arg0: i32, %arg1: i32) -> (i32, i32) {
    %c0_i32 = arith.constant 0 : i32
    %c0_i32_0 = arith.constant 0 : i32
    return %c0_i32, %arg1 : i32, i32
  }
  func.func @transform_2(%arg0: i32, %arg1: i32) -> (i32, i32) {
    %c0_i32 = arith.constant 0 : i32
    %c0_i32_0 = arith.constant 0 : i32
    return %c0_i32, %arg1 : i32, i32
  }
  func.func @transform_3(%arg0: i32, %arg1: i32) -> (i32, i32) {
    %c0_i32 = arith.constant 0 : i32
    return %arg0, %arg1 : i32, i32
  }
}

</mosaic_0001>

<bundles_post_ra>
// kernel: bert_pooler.1
= control target key start
LH: loop header
LB: loop body
LE: loop exit
PB: predicated region body
PF: predicated region fallthrough
CT: control target
= control target key end

     0   :  { %8 = vsyncpa [#allocation4], 0  ;;  %s1248_s0 = inlined_call_operand.vmem [shape: f32[16,4096], index: 0, kind: input, shape index: {}]   ;;  %s1249_s1 = inlined_call_operand.hbm [shape: f32[512,512], index: 1, kind: input, shape index: {}]   ;;  %s1250_s2 = inlined_call_operand.vmem [shape: f32[1,512], index: 2, kind: input, shape index: {}]   ;;  %s1251_s3 = inlined_call_operand.hbm [shape: f32[16,512], index: 3, kind: output, shape index: {}]  }
   0x1   :  { %10 = vsyncpa [#allocation4 + $0x1], 0 }
   0x2   :  { %11 = vsyncpa [#allocation5], 0 }
   0x3   :  { %13 = vsyncpa [#allocation5 + $0x1], 0  ;;  %s937_s12 = smov 0   ;;  %s939_s13 = smov 0  }
   0x4   :  { %s941_s14 = smov 0   ;;  %s943_s15 = smov 0  }
   0x5   :  { %s945_s16 = smov 0   ;;  %s947_s17 = smov 0  }
   0x6 LB: > { %s704_s18 = sadd.s32 4294967295, %s907_s17   ;;  %s705_s19 = sadd.s32 4294967294, %s907_s17   ;;  %s907_s17 = sphi %s947_s17, %s19_s17   ;;  %s903_s16 = sphi %s945_s16, %s1263_s16   ;;  %s899_s15 = sphi %s943_s15, %s1262_s15   ;;  %s895_s14 = sphi %s941_s14, %s1261_s14   ;;  %s891_s13 = sphi %s939_s13, %s1260_s13   ;;  %s887_s12 = sphi %s937_s12, %s1259_s12  }
   0x7   : > { %s28_s20 = sadd.s32 1, %s903_s16  ;;  %s64_s21 = sadd.s32 1, %s895_s14 }
   0x8   : > { %p29_p0 = scmp.ge.s32.totalorder %s28_s20, 2  ;;  %p71_p1 = scmp.ne.s32.totalorder %s895_s14, %s891_s13 }
   0x9   : > { %p72_p2 = scmp.eq.s32.totalorder %s907_s17, 0  ;;  %p77_p3 = scmp.ne.s32.totalorder %s891_s13, %s887_s12 }
   0xa   : > { %s1265_s20 = smov (%p29_p0, %s28_s20), 0  ;;  %p78_p5 = scmp.eq.s32.totalorder %s704_s18, 0 }
   0xb   : > { %p978_p4 = por %p72_p2, %p71_p1  ;;  %s61_s23 = ssub.s32 %s903_s16, %s1265_s20 }
   0xc   : > { %p129_p6 = scmp.eq.s32.totalorder %s704_s18, 1  ;;  %p62_p7 = scmp.eq.s32.totalorder %s61_s23, 0 }
   0xd   : > { %p984_p8 = por %p78_p5, %p77_p3  ;;  %p135_p10 = scmp.eq.s32.totalorder %s705_s19, 1 }
   0xe   : > { %p988_p9 = por %p129_p6, %p71_p1  ;;  %p706_p12 = scmp.ge.s32.totalorder %s907_s17, 1 }
   0xf   : > { %s993_s26 = scalar_select %p62_p7, %s895_s14, %s64_s21  }
  0x10   : > { %p995_p11 = por %p135_p10, %p77_p3  ;;  %p142_p13 = scmp.lt.s32.totalorder %s907_s17, 3 }
  0x12   : > { %p1001_p0 = pnand %p706_p12, %p142_p13 }
  0x13   : > { %p707_p1 = scmp.ne.s32.totalorder (!%p1001_p0), %s704_s18, 0 }
  0x14   : > { %146 = sbr.rel (%p1001_p0) target bundleno = 35 (0x23), region = 12 }
  0x19   : > { %150 = sbr.rel (%p707_p1) target bundleno = 35 (0x23), region = 16 }
  0x1e   : > { %v167_v0 = vld [vmem:[%s1248_s0] sm:$0xff]  ;;  %v169_v1 = vld [vmem:[%s1248_s0 + $0x8] sm:$0xff]  ;;  %v171_v2 = vld [vmem:[%s1248_s0 + $0x10] sm:$0xff] }
  0x1f   : > { %168 = vst [vmem:[#allocation2 + $0x30] sm:$0xff] %v167_v0  ;;  %170 = vst [vmem:[#allocation2] sm:$0xff] %v169_v1  ;;  %v173_v3 = vld [vmem:[%s1248_s0 + $0x18] sm:$0xff]  ;;  %v175_v4 = vld [vmem:[%s1248_s0 + $0x100] sm:$0xff] }
  0x20   : > { %172 = vst [vmem:[#allocation2 + $0x18] sm:$0xff] %v171_v2  ;;  %v177_v5 = vld [vmem:[%s1248_s0 + $0x108] sm:$0xff]  ;;  %174 = vst [vmem:[#allocation2 + $0x10] sm:$0xff] %v173_v3  ;;  %v179_v6 = vld [vmem:[%s1248_s0 + $0x110] sm:$0xff] }
  0x21   : > { %176 = vst [vmem:[#allocation2 + $0x8] sm:$0xff] %v175_v4  ;;  %178 = vst [vmem:[#allocation2 + $0x20] sm:$0xff] %v177_v5  ;;  %v181_v7 = vld [vmem:[%s1248_s0 + $0x118] sm:$0xff] }
  0x22   : > { %180 = vst [vmem:[#allocation2 + $0x28] sm:$0xff] %v179_v6  ;;  %182 = vst [vmem:[#allocation2 + $0x38] sm:$0xff] %v181_v7 }
  0x23 PF: > { %p735_p3 = scmp.lt.s32.totalorder %s907_s17, 2  ;;  %s193_s4 = sand.u32 1, %s895_s14  }
  0x24   : > { %s721_s5 = sshll.u32 %s903_s16, 8  ;;  %s709_s6 = sshll.u32 %s193_s4, 10 }
  0x25   : > { %s203_s9 = scalar_lea.hbm %s1249_s1, %s721_s5  ;;  %s197_s10 = scalar_lea.vmem [#allocation3], %s709_s6 }
  0x26   : > { %s204_s11 = sshll.u32 %s197_s10, 4  ;;  %p1040_p5 = pnand %p735_p3, %p978_p4  ;;  %s205_s11 = int_to_ptr.vmem [resolvable:$true] %s204_s11 }
  0x27   : > { %s194_s19 = scalar_lea.sflag [#allocation4], %s193_s4  ;;  %s812_s21 = scalar_lea.vmem %s205_s11, 16384 }
  0x28   : > { %p801_p6 = pneg %p1040_p5  ;;  %p813_p7 = scmp.ne.s32.totalorder %s205_s11, %s812_s21 }
  0x29   : > { %s909_s23 = smov [#allocation3]  }
  0x2a   : > { %p815_p10 = pnand %p813_p7, %p801_p6  ;;  %s817_s29 = sshll.u32 %s909_s23, 4  ;;  %s818_s29 = int_to_ptr.vmem [resolvable:$false] %s817_s29 }
  0x2b   : > { %s819_s30 = scalar_lea.vmem %s818_s29, 32768  ;;  %p820_p13 = scmp.lt.s32.totalorder %s205_s11, %s818_s29 }
  0x2c   : > { %p816_p12 = pneg %p815_p10  ;;  %p821_p1 = scmp.lt.s32.totalorder %s819_s30, %s812_s21 }
  0x2e   : > { %p822_p2 = por %p821_p1, %p820_p13 }
  0x30   : > { %p823_p4 = pnand %p822_p2, %p816_p12 }
  0x32   : > { %826 = shalt.err (!%p823_p4)
}
  0x33   : > { %s910_s22 = smov 512   ;;  %s911_s5 = smov 256  }
  0x34   : > { %s912_s6 = smov 16   ;;  %224 = sbr.rel (%p1001_p0) target bundleno = 356 (0x164), region = 51 }
  0x35   : > { %730 = dma.hbm_to_vmem [thread:$0]  (!%p1040_p5), %s203_s9, 16384, %s205_s11, %s194_s19, %s910_s22, %s911_s5, %s912_s6  }
  0x36   : > { %s1051_s4 = sand.u32 (!%p1001_p0), 1, %s891_s13  }
  0x37   : > { %s713_s7 = sshll.u32 (!%p1001_p0), %s1051_s4, 10  ;;  %s230_s8 = scalar_lea.sflag (!%p1001_p0), [#allocation4], %s1051_s4 }
  0x38   : > { %s1055_s10 = scalar_lea.vmem (!%p1001_p0), [#allocation3], %s713_s7 }
  0x39   : > { %878 = dma.done.wait (%p984_p8), %s230_s8, 16384  }
  0x3a   : > { %880 = vsyncadd (%p984_p8), %s230_s8, 4294950912  ;;  %v308_v8 = vld [vmem:[%s1055_s10 + $0xf8] sm:$0xff]  ;;  %v307_v10 = vld [vmem:[%s1055_s10 + $0xf0] sm:$0xff]  ;;  %s715_s24 = sshll.u32 %s899_s15, 1  ;;  %s714_s18 = sshll.u32 %s1051_s4, 5 }
  0x3b   : > { %v372_v9 = vld [vmem:[%s1055_s10 + $0x2f8] sm:$0xff]  ;;  %417 = vmatprep.subr.mxu0 %v308_v8  ;;  %v371_v11 = vld [vmem:[%s1055_s10 + $0x2f0] sm:$0xff]  ;;  %v306_v12 = vld [vmem:[%s1055_s10 + $0xe8] sm:$0xff]  ;;  %p263_p8 = scmp.lt.s32.totalorder %s715_s24, 3  ;;  %s722_s19 = sshll.u32 %s899_s15, 8 }
  0x3c   : > { %494 = vmatprep.subr.mxu1 %v372_v9  ;;  %v370_v13 = vld [vmem:[%s1055_s10 + $0x2e8] sm:$0xff]  ;;  %418 = vmatpush1.msra.mxu0 %v307_v10  ;;  %v305_v14 = vld [vmem:[%s1055_s10 + $0xe0] sm:$0xff]  ;;  %v304_v16 = vld [vmem:[%s1055_s10 + $0xd8] sm:$0xff]  ;;  %s259_s21 = scalar_lea.vmem [#allocation6], %s714_s18  ;;  %s1198_s22 = scalar_lea.hbm %s1251_s3, %s722_s19 }
  0x3d   : > { %495 = vmatpush1.msra.mxu1 %v371_v11  ;;  %v369_v15 = vld [vmem:[%s1055_s10 + $0x2e0] sm:$0xff]  ;;  %419 = vmatprep.subr.mxu0 %v306_v12  ;;  %v368_v17 = vld [vmem:[%s1055_s10 + $0x2d8] sm:$0xff]  ;;  %v303_v18 = vld [vmem:[%s1055_s10 + $0xd0] sm:$0xff]  ;;  %s1267_s24 = smov (!%p263_p8, %s715_s24), 3  ;;  %s596_s23 = sshll.u32 %s259_s21, 4  ;;  %s1200_s23 = int_to_ptr.vmem [resolvable:$true] %s596_s23 }
  0x3e   : > { %496 = vmatprep.subr.mxu1 %v370_v13  ;;  %v367_v19 = vld [vmem:[%s1055_s10 + $0x2d0] sm:$0xff]  ;;  %420 = vmatpush1.msra.mxu0 %v305_v14  ;;  %v302_v20 = vld [vmem:[%s1055_s10 + $0xc8] sm:$0xff]  ;;  %v301_v22 = vld [vmem:[%s1055_s10 + $0xc0] sm:$0xff]  ;;  %s265_s11 = scalar_lea.vmem %s1250_s2, %s1267_s24  ;;  %s580_s15 = scalar_lea.sflag [#allocation5], %s1051_s4 }
  0x3f   : > { %497 = vmatpush1.msra.mxu1 %v369_v15  ;;  %v366_v21 = vld [vmem:[%s1055_s10 + $0x2c8] sm:$0xff]  ;;  %421 = vmatprep.subr.mxu0 %v304_v16  ;;  %v365_v23 = vld [vmem:[%s1055_s10 + $0x2c0] sm:$0xff]  ;;  %v300_v24 = vld [vmem:[%s1055_s10 + $0xb8] sm:$0xff]  ;;  %s827_s5 = scalar_lea.vmem %s1200_s23, 512  ;;  %s913_s6 = smov [#allocation6]  }
  0x40   : > { %498 = vmatprep.subr.mxu1 %v368_v17  ;;  %422 = vmatpush1.msra.mxu0 %v303_v18  ;;  %v364_v25 = vld [vmem:[%s1055_s10 + $0x2b8] sm:$0xff]  ;;  %v299_v26 = vld [vmem:[%s1055_s10 + $0xb0] sm:$0xff]  ;;  %v298_v28 = vld [vmem:[%s1055_s10 + $0xa8] sm:$0xff]  ;;  %p828_p0 = scmp.ne.s32.totalorder %s1200_s23, %s827_s5  ;;  %s831_s7 = sshll.u32 %s913_s6, 4  ;;  %s832_s7 = int_to_ptr.vmem [resolvable:$false] %s831_s7 }
  0x41   : > { %499 = vmatpush1.msra.mxu1 %v367_v19  ;;  %423 = vmatprep.subr.mxu0 %v302_v20  ;;  %v363_v27 = vld [vmem:[%s1055_s10 + $0x2b0] sm:$0xff]  ;;  %v362_v29 = vld [vmem:[%s1055_s10 + $0x2a8] sm:$0xff]  ;;  %v297_v30 = vld [vmem:[%s1055_s10 + $0xa0] sm:$0xff]  ;;  %s833_s8 = scalar_lea.vmem %s832_s7, 1024  ;;  %p834_p5 = scmp.lt.s32.totalorder %s1200_s23, %s832_s7 }
  0x42   : > { %500 = vmatprep.subr.mxu1 %v366_v21  ;;  %424 = vmatpush1.msra.mxu0 %v301_v22  ;;  %v361_v31 = vld [vmem:[%s1055_s10 + $0x2a0] sm:$0xff]  ;;  %v296_v32 = vld [vmem:[%s1055_s10 + $0x98] sm:$0xff]  ;;  %v295_v34 = vld [vmem:[%s1055_s10 + $0x90] sm:$0xff]  ;;  %p829_p2 = pnand %p828_p0, %p988_p9  ;;  %p835_p6 = scmp.lt.s32.totalorder %s833_s8, %s827_s5 }
  0x43   : > { %501 = vmatpush1.msra.mxu1 %v365_v23  ;;  %425 = vmatprep.subr.mxu0 %v300_v24  ;;  %v360_v33 = vld [vmem:[%s1055_s10 + $0x298] sm:$0xff]  ;;  %v359_v35 = vld [vmem:[%s1055_s10 + $0x290] sm:$0xff]  ;;  %v294_v36 = vld [vmem:[%s1055_s10 + $0x88] sm:$0xff] }
  0x44   : > { %502 = vmatprep.subr.mxu1 %v364_v25  ;;  %426 = vmatpush1.msra.mxu0 %v299_v26  ;;  %v358_v37 = vld [vmem:[%s1055_s10 + $0x288] sm:$0xff]  ;;  %v293_v38 = vld [vmem:[%s1055_s10 + $0x80] sm:$0xff]  ;;  %v292_v40 = vld [vmem:[%s1055_s10 + $0x78] sm:$0xff]  ;;  %p830_p3 = pneg %p829_p2  ;;  %p836_p7 = por %p835_p6, %p834_p5 }
  0x45   : > { %503 = vmatpush1.msra.mxu1 %v363_v27  ;;  %427 = vmatprep.subr.mxu0 %v298_v28  ;;  %v357_v39 = vld [vmem:[%s1055_s10 + $0x280] sm:$0xff]  ;;  %v356_v41 = vld [vmem:[%s1055_s10 + $0x278] sm:$0xff]  ;;  %v291_v42 = vld [vmem:[%s1055_s10 + $0x70] sm:$0xff] }
  0x46   : > { %504 = vmatprep.subr.mxu1 %v362_v29  ;;  %428 = vmatpush1.msra.mxu0 %v297_v30  ;;  %v355_v43 = vld [vmem:[%s1055_s10 + $0x270] sm:$0xff]  ;;  %v290_v44 = vld [vmem:[%s1055_s10 + $0x68] sm:$0xff]  ;;  %v289_v46 = vld [vmem:[%s1055_s10 + $0x60] sm:$0xff]  ;;  %p837_p10 = pnand %p836_p7, %p830_p3 }
  0x47   : > { %505 = vmatpush1.msra.mxu1 %v361_v31  ;;  %429 = vmatprep.subr.mxu0 %v296_v32  ;;  %v354_v45 = vld [vmem:[%s1055_s10 + $0x268] sm:$0xff]  ;;  %v353_v47 = vld [vmem:[%s1055_s10 + $0x260] sm:$0xff]  ;;  %v288_v48 = vld [vmem:[%s1055_s10 + $0x58] sm:$0xff] }
  0x48   : > { %506 = vmatprep.subr.mxu1 %v360_v33  ;;  %430 = vmatpush1.msra.mxu0 %v295_v34  ;;  %v352_v49 = vld [vmem:[%s1055_s10 + $0x258] sm:$0xff]  ;;  %v287_v50 = vld [vmem:[%s1055_s10 + $0x50] sm:$0xff]  ;;  %v286_v52 = vld [vmem:[%s1055_s10 + $0x48] sm:$0xff] }
  0x49   : > { %507 = vmatpush1.msra.mxu1 %v359_v35  ;;  %431 = vmatprep.subr.mxu0 %v294_v36  ;;  %v351_v51 = vld [vmem:[%s1055_s10 + $0x250] sm:$0xff]  ;;  %v350_v53 = vld [vmem:[%s1055_s10 + $0x248] sm:$0xff]  ;;  %v285_v54 = vld [vmem:[%s1055_s10 + $0x40] sm:$0xff] }
  0x4a   : > { %508 = vmatprep.subr.mxu1 %v358_v37  ;;  %432 = vmatpush1.msra.mxu0 %v293_v38  ;;  %v349_v55 = vld [vmem:[%s1055_s10 + $0x240] sm:$0xff]  ;;  %v284_v56 = vld [vmem:[%s1055_s10 + $0x38] sm:$0xff]  ;;  %v283_v58 = vld [vmem:[%s1055_s10 + $0x30] sm:$0xff] }
  0x4b   : > { %509 = vmatpush1.msra.mxu1 %v357_v39  ;;  %433 = vmatprep.subr.mxu0 %v292_v40  ;;  %v348_v57 = vld [vmem:[%s1055_s10 + $0x238] sm:$0xff]  ;;  %v347_v59 = vld [vmem:[%s1055_s10 + $0x230] sm:$0xff]  ;;  %v282_v60 = vld [vmem:[%s1055_s10 + $0x28] sm:$0xff] }
  0x4c   : > { %510 = vmatprep.subr.mxu1 %v356_v41  ;;  %434 = vmatpush1.msra.mxu0 %v291_v42  ;;  %v346_v61 = vld [vmem:[%s1055_s10 + $0x228] sm:$0xff]  ;;  %v281_v62 = vld [vmem:[%s1055_s10 + $0x20] sm:$0xff]  ;;  %v280_v0 = vld [vmem:[%s1055_s10 + $0x18] sm:$0xff] }
  0x4d   : > { %511 = vmatpush1.msra.mxu1 %v355_v43  ;;  %435 = vmatprep.subr.mxu0 %v290_v44  ;;  %v345_v63 = vld [vmem:[%s1055_s10 + $0x220] sm:$0xff]  ;;  %v344_v1 = vld [vmem:[%s1055_s10 + $0x218] sm:$0xff]  ;;  %v279_v2 = vld [vmem:[%s1055_s10 + $0x10] sm:$0xff] }
  0x4e   : > { %512 = vmatprep.subr.mxu1 %v354_v45  ;;  %436 = vmatpush1.msra.mxu0 %v289_v46  ;;  %v343_v3 = vld [vmem:[%s1055_s10 + $0x210] sm:$0xff]  ;;  %v278_v4 = vld [vmem:[%s1055_s10 + $0x8] sm:$0xff]  ;;  %v277_v6 = vld [vmem:[%s1055_s10] sm:$0xff] }
  0x4f   : > { %513 = vmatpush1.msra.mxu1 %v353_v47  ;;  %437 = vmatprep.subr.mxu0 %v288_v48  ;;  %v342_v5 = vld [vmem:[%s1055_s10 + $0x208] sm:$0xff]  ;;  %v341_v7 = vld [vmem:[%s1055_s10 + $0x200] sm:$0xff]  ;;  %v340_v8 = vld [vmem:[%s1055_s10 + $0x1f8] sm:$0xff] }
  0x50   : > { %514 = vmatprep.subr.mxu1 %v352_v49  ;;  %438 = vmatpush1.msra.mxu0 %v287_v50  ;;  %v404_v9 = vld [vmem:[%s1055_s10 + $0x3f8] sm:$0xff]  ;;  %v339_v10 = vld [vmem:[%s1055_s10 + $0x1f0] sm:$0xff]  ;;  %v338_v12 = vld [vmem:[%s1055_s10 + $0x1e8] sm:$0xff] }
  0x51   : > { %515 = vmatpush1.msra.mxu1 %v351_v51  ;;  %439 = vmatprep.subr.mxu0 %v286_v52  ;;  %v403_v11 = vld [vmem:[%s1055_s10 + $0x3f0] sm:$0xff]  ;;  %v402_v13 = vld [vmem:[%s1055_s10 + $0x3e8] sm:$0xff]  ;;  %v337_v14 = vld [vmem:[%s1055_s10 + $0x1e0] sm:$0xff] }
  0x52   : > { %516 = vmatprep.subr.mxu1 %v350_v53  ;;  %440 = vmatpush1.msra.mxu0 %v285_v54  ;;  %v401_v15 = vld [vmem:[%s1055_s10 + $0x3e0] sm:$0xff]  ;;  %v336_v16 = vld [vmem:[%s1055_s10 + $0x1d8] sm:$0xff]  ;;  %v335_v18 = vld [vmem:[%s1055_s10 + $0x1d0] sm:$0xff] }
  0x53   : > { %517 = vmatpush1.msra.mxu1 %v349_v55  ;;  %441 = vmatprep.subr.mxu0 %v284_v56  ;;  %v400_v17 = vld [vmem:[%s1055_s10 + $0x3d8] sm:$0xff]  ;;  %v399_v19 = vld [vmem:[%s1055_s10 + $0x3d0] sm:$0xff]  ;;  %v334_v20 = vld [vmem:[%s1055_s10 + $0x1c8] sm:$0xff] }
  0x54   : > { %518 = vmatprep.subr.mxu1 %v348_v57  ;;  %442 = vmatpush1.msra.mxu0 %v283_v58  ;;  %v398_v21 = vld [vmem:[%s1055_s10 + $0x3c8] sm:$0xff]  ;;  %v333_v22 = vld [vmem:[%s1055_s10 + $0x1c0] sm:$0xff]  ;;  %v332_v24 = vld [vmem:[%s1055_s10 + $0x1b8] sm:$0xff] }
  0x55   : > { %519 = vmatpush1.msra.mxu1 %v347_v59  ;;  %443 = vmatprep.subr.mxu0 %v282_v60  ;;  %v397_v23 = vld [vmem:[%s1055_s10 + $0x3c0] sm:$0xff]  ;;  %v396_v25 = vld [vmem:[%s1055_s10 + $0x3b8] sm:$0xff]  ;;  %v331_v26 = vld [vmem:[%s1055_s10 + $0x1b0] sm:$0xff] }
  0x56   : > { %520 = vmatprep.subr.mxu1 %v346_v61  ;;  %444 = vmatpush1.msra.mxu0 %v281_v62  ;;  %v395_v27 = vld [vmem:[%s1055_s10 + $0x3b0] sm:$0xff]  ;;  %v330_v28 = vld [vmem:[%s1055_s10 + $0x1a8] sm:$0xff]  ;;  %v329_v30 = vld [vmem:[%s1055_s10 + $0x1a0] sm:$0xff] }
  0x57   : > { %521 = vmatpush1.msra.mxu1 %v345_v63  ;;  %445 = vmatprep.subr.mxu0 %v280_v0  ;;  %v394_v29 = vld [vmem:[%s1055_s10 + $0x3a8] sm:$0xff]  ;;  %v393_v31 = vld [vmem:[%s1055_s10 + $0x3a0] sm:$0xff]  ;;  %v328_v32 = vld [vmem:[%s1055_s10 + $0x198] sm:$0xff] }
  0x58   : > { %522 = vmatprep.subr.mxu1 %v344_v1  ;;  %446 = vmatpush1.msra.mxu0 %v279_v2  ;;  %v392_v33 = vld [vmem:[%s1055_s10 + $0x398] sm:$0xff]  ;;  %v327_v34 = vld [vmem:[%s1055_s10 + $0x190] sm:$0xff]  ;;  %v326_v36 = vld [vmem:[%s1055_s10 + $0x188] sm:$0xff] }
  0x59   : > { %523 = vmatpush1.msra.mxu1 %v343_v3  ;;  %447 = vmatprep.subr.mxu0 %v278_v4  ;;  %v391_v35 = vld [vmem:[%s1055_s10 + $0x390] sm:$0xff]  ;;  %v390_v37 = vld [vmem:[%s1055_s10 + $0x388] sm:$0xff]  ;;  %v325_v38 = vld [vmem:[%s1055_s10 + $0x180] sm:$0xff] }
  0x5a   : > { %524 = vmatprep.subr.mxu1 %v342_v5  ;;  %448 = vmatpush1.msra.mxu0 %v277_v6  ;;  %v389_v39 = vld [vmem:[%s1055_s10 + $0x380] sm:$0xff]  ;;  %v324_v40 = vld [vmem:[%s1055_s10 + $0x178] sm:$0xff]  ;;  %v323_v42 = vld [vmem:[%s1055_s10 + $0x170] sm:$0xff] }
  0x5b   : > { %525 = vmatpush1.msra.mxu1 %v341_v7  ;;  %449 = vmatprep.subr.mxu0 %v340_v8  ;;  %v388_v41 = vld [vmem:[%s1055_s10 + $0x378] sm:$0xff]  ;;  %v387_v43 = vld [vmem:[%s1055_s10 + $0x370] sm:$0xff]  ;;  %v322_v44 = vld [vmem:[%s1055_s10 + $0x168] sm:$0xff] }
  0x5c   : > { %526 = vmatprep.subr.mxu1 %v404_v9  ;;  %450 = vmatpush2.msra.mxu0 %v339_v10  ;;  %v386_v45 = vld [vmem:[%s1055_s10 + $0x368] sm:$0xff]  ;;  %v321_v46 = vld [vmem:[%s1055_s10 + $0x160] sm:$0xff]  ;;  %v320_v48 = vld [vmem:[%s1055_s10 + $0x158] sm:$0xff] }
  0x5d   : > { %527 = vmatpush2.msra.mxu1 %v403_v11  ;;  %451 = vmatprep.subr.mxu0 %v338_v12  ;;  %v385_v47 = vld [vmem:[%s1055_s10 + $0x360] sm:$0xff]  ;;  %v384_v49 = vld [vmem:[%s1055_s10 + $0x358] sm:$0xff]  ;;  %v319_v50 = vld [vmem:[%s1055_s10 + $0x150] sm:$0xff] }
  0x5e   : > { %528 = vmatprep.subr.mxu1 %v402_v13  ;;  %452 = vmatpush2.msra.mxu0 %v337_v14  ;;  %v383_v51 = vld [vmem:[%s1055_s10 + $0x350] sm:$0xff]  ;;  %v318_v52 = vld [vmem:[%s1055_s10 + $0x148] sm:$0xff]  ;;  %v317_v54 = vld [vmem:[%s1055_s10 + $0x140] sm:$0xff] }
  0x5f   : > { %529 = vmatpush2.msra.mxu1 %v401_v15  ;;  %453 = vmatprep.subr.mxu0 %v336_v16  ;;  %v382_v53 = vld [vmem:[%s1055_s10 + $0x348] sm:$0xff]  ;;  %v381_v55 = vld [vmem:[%s1055_s10 + $0x340] sm:$0xff]  ;;  %v316_v56 = vld [vmem:[%s1055_s10 + $0x138] sm:$0xff]  ;;  %v407_v16 = vlaneseq }
  0x60   : > { %530 = vmatprep.subr.mxu1 %v400_v17  ;;  %454 = vmatpush2.msra.mxu0 %v335_v18  ;;  %v380_v57 = vld [vmem:[%s1055_s10 + $0x338] sm:$0xff]  ;;  %v315_v58 = vld [vmem:[%s1055_s10 + $0x130] sm:$0xff]  ;;  %v314_v60 = vld [vmem:[%s1055_s10 + $0x128] sm:$0xff] }
  0x61   : > { %531 = vmatpush2.msra.mxu1 %v399_v19  ;;  %455 = vmatprep.subr.mxu0 %v334_v20  ;;  %v379_v59 = vld [vmem:[%s1055_s10 + $0x330] sm:$0xff]  ;;  %v378_v61 = vld [vmem:[%s1055_s10 + $0x328] sm:$0xff]  ;;  %v313_v62 = vld [vmem:[%s1055_s10 + $0x120] sm:$0xff]  ;;  %v408_v17 = vshrl.u32 %v407_v16, 7 }
  0x62   : > { %532 = vmatprep.subr.mxu1 %v398_v21  ;;  %456 = vmatpush2.msra.mxu0 %v333_v22  ;;  %v377_v63 = vld [vmem:[%s1055_s10 + $0x320] sm:$0xff]  ;;  %v312_v0 = vld [vmem:[%s1055_s10 + $0x118] sm:$0xff]  ;;  %v311_v2 = vld [vmem:[%s1055_s10 + $0x110] sm:$0xff] }
  0x63   : > { %533 = vmatpush2.msra.mxu1 %v397_v23  ;;  %457 = vmatprep.subr.mxu0 %v332_v24  ;;  %v376_v1 = vld [vmem:[%s1055_s10 + $0x318] sm:$0xff]  ;;  %v375_v3 = vld [vmem:[%s1055_s10 + $0x310] sm:$0xff]  ;;  %v310_v4 = vld [vmem:[%s1055_s10 + $0x108] sm:$0xff]  ;;  %v409_v18 = vsub.s32 0, %v408_v17  ;;  %v413_v20 = vsub.s32 1, %v408_v17 }
  0x64   : > { %534 = vmatprep.subr.mxu1 %v396_v25  ;;  %458 = vmatpush2.msra.mxu0 %v331_v26  ;;  %v374_v5 = vld [vmem:[%s1055_s10 + $0x308] sm:$0xff]  ;;  %v309_v6 = vld [vmem:[%s1055_s10 + $0x100] sm:$0xff]  ;;  %v272_v9 = vld [vmem:[#allocation2 + $0x10] sm:$0xff] }
  0x65   : > { %535 = vmatpush2.msra.mxu1 %v395_v27  ;;  %459 = vmatprep.subr.mxu0 %v330_v28  ;;  %v270_v7 = vld [vmem:[#allocation2] sm:$0xff]  ;;  %v269_v10 = vld [vmem:[#allocation2 + $0x30] sm:$0xff]  ;;  %v271_v11 = vld [vmem:[#allocation2 + $0x18] sm:$0xff] }
  0x66   : > { %536 = vmatprep.subr.mxu1 %v394_v29  ;;  %460 = vmatpush2.msra.mxu0 %v329_v30  ;;  %v373_v8 = vld [vmem:[%s1055_s10 + $0x300] sm:$0xff]  ;;  %v276_v13 = vld [vmem:[#allocation2 + $0x38] sm:$0xff]  ;;  %v273_v14 = vld [vmem:[#allocation2 + $0x8] sm:$0xff] }
  0x67   : > { %537 = vmatpush2.msra.mxu1 %v393_v31  ;;  %461 = vmatprep.subr.mxu0 %v328_v32  ;;  %v274_v12 = vld [vmem:[#allocation2 + $0x20] sm:$0xff]  ;;  %v275_v15 = vld [vmem:[#allocation2 + $0x28] sm:$0xff] }
  0x68   : > { %538 = vmatprep.subr.mxu1 %v392_v33  ;;  %462 = vmatpush2.msra.mxu0 %v327_v34  ;;  %v405_v19 = vld [vmem:[%s265_s11] sm:$0x3] }
  0x69   : > { %539 = vmatpush2.msra.mxu1 %v391_v35  ;;  %463 = vmatprep.subr.mxu0 %v326_v36  ;;  %v410_v21 = vrot.slane %v405_v19, %v409_v18  ;;  %v414_v22 = vrot.slane %v405_v19, %v413_v20 }
  0x6a   : > { %540 = vmatprep.subr.mxu1 %v390_v37  ;;  %464 = vmatpush2.msra.mxu0 %v325_v38 }
  0x6b   : > { %541 = vmatpush2.msra.mxu1 %v389_v39  ;;  %465 = vmatprep.subr.mxu0 %v324_v40 }
  0x6c   : > { %542 = vmatprep.subr.mxu1 %v388_v41  ;;  %466 = vmatpush2.msra.mxu0 %v323_v42 }
  0x6d   : > { %543 = vmatpush2.msra.mxu1 %v387_v43  ;;  %467 = vmatprep.subr.mxu0 %v322_v44 }
  0x6e   : > { %544 = vmatprep.subr.mxu1 %v386_v45  ;;  %468 = vmatpush2.msra.mxu0 %v321_v46 }
  0x6f   : > { %545 = vmatpush2.msra.mxu1 %v385_v47  ;;  %469 = vmatprep.subr.mxu0 %v320_v48 }
  0x70   : > { %546 = vmatprep.subr.mxu1 %v384_v49  ;;  %470 = vmatpush2.msra.mxu0 %v319_v50 }
  0x71   : > { %547 = vmatpush2.msra.mxu1 %v383_v51  ;;  %471 = vmatprep.subr.mxu0 %v318_v52 }
  0x72   : > { %548 = vmatprep.subr.mxu1 %v382_v53  ;;  %472 = vmatpush2.msra.mxu0 %v317_v54 }
  0x73   : > { %549 = vmatpush2.msra.mxu1 %v381_v55  ;;  %473 = vmatprep.subr.mxu0 %v316_v56 }
  0x74   : > { %550 = vmatprep.subr.mxu1 %v380_v57  ;;  %474 = vmatpush2.msra.mxu0 %v315_v58 }
  0x75   : > { %551 = vmatpush2.msra.mxu1 %v379_v59  ;;  %475 = vmatprep.subr.mxu0 %v314_v60 }
  0x76   : > { %552 = vmatprep.subr.mxu1 %v378_v61  ;;  %476 = vmatpush2.msra.mxu0 %v313_v62 }
  0x77   : > { %553 = vmatpush2.msra.mxu1 %v377_v63  ;;  %477 = vmatprep.subr.mxu0 %v312_v0 }
  0x78   : > { %554 = vmatprep.subr.mxu1 %v376_v1  ;;  %478 = vmatpush2.msra.mxu0 %v311_v2 }
  0x79   : > { %555 = vmatpush2.msra.mxu1 %v375_v3  ;;  %479 = vmatprep.subr.mxu0 %v310_v4 }
  0x7a   : > { %556 = vmatprep.subr.mxu1 %v374_v5  ;;  %480 = vmatpush2.msra.mxu0 %v309_v6 }
  0x7b   : > { %481 = vmatprep.mubr.f32.mxu0 %v270_v7  ;;  %557 = vmatpush2.msra.mxu1 %v373_v8 }
  0x7c   : > { %558 = vmatprep.mubr.f32.mxu1 %v272_v9  ;;  %482 = vmatmul.mubr.f32.vlgmr.msra.gmra.mxu0 %v269_v10 }
  0x7d   : > { %559 = vmatmul.mubr.f32.vlgmr.msra.gmra.mxu1 %v271_v11  ;;  %487 = vmatprep.mubr.f32.mxu0 %v274_v12 }
  0x7e   : > { %564 = vmatprep.mubr.f32.mxu1 %v276_v13 }
  0x80   : > { %488 = vmatmul.mubr.f32.gmra.mxu0 %v273_v14 }
  0x81   : > { %565 = vmatmul.mubr.f32.gmra.mxu1 %v275_v15 }
 0x13c   : > { %v483_v23 = vpop.f32.mrf.mxu0 }
 0x13d   : > { %v560_v24 = vpop.f32.mrf.mxu1  ;;  %v484_v25 = vadd.f32 %v483_v23, %v410_v21 }
 0x13e   : > { %v485_v26 = vpop.f32.mrf.mxu0 }
 0x13f   : > { %v562_v27 = vpop.f32.mrf.mxu1  ;;  %v561_v28 = vadd.f32 %v560_v24, %v484_v25  ;;  %v486_v29 = vadd.f32 %v485_v26, %v414_v22 }
 0x140   : > { %v489_v30 = vpop.f32.mrf.mxu0 }
 0x141   : > { %v566_v31 = vpop.f32.mrf.mxu1  ;;  %791 = vtanh.f32 %v561_v28  ;;  %v563_v32 = vadd.f32 %v562_v27, %v486_v29  ;;  %v490_v33 = vadd.f32 %v489_v30, %v410_v21 }
 0x142   : > { %v491_v34 = vpop.f32.mrf.mxu0 }
 0x143   : > { %793 = vtanh.f32 %v563_v32  ;;  %v567_v35 = vadd.f32 %v566_v31, %v490_v33  ;;  %v492_v36 = vadd.f32 %v491_v34, %v414_v22  ;;  %v568_v37 = vpop.f32.mrf.mxu1 }
 0x145   : > { %795 = vtanh.f32 %v567_v35  ;;  %v569_v38 = vadd.f32 %v568_v37, %v492_v36 }
 0x147   : > { %797 = vtanh.f32 %v569_v38 }
 0x14e   : > { %v792_v39 = vpop.eup %791 }
 0x14f   : > { %575 = vst [vmem:[%s259_s21] sm:$0xff] %v792_v39 }
 0x150   : > { %v794_v40 = vpop.eup %793 }
 0x151   : > { %576 = vst [vmem:[%s259_s21 + $0x8] sm:$0xff] %v794_v40 }
 0x152   : > { %v796_v41 = vpop.eup %795 }
 0x153   : > { %577 = vst [vmem:[%s259_s21 + $0x10] sm:$0xff] %v796_v41 }
 0x154   : > { %v798_v42 = vpop.eup %797 }
 0x155   : > { %578 = vst [vmem:[%s259_s21 + $0x18] sm:$0xff] %v798_v42 }
 0x156   : > { %840 = shalt.err (!%p837_p10)
}
 0x157   : > { %s841_s10 = scalar_lea.hbm %s1198_s22, 512  ;;  %s845_s9 = scalar_lea.hbm %s1251_s3, 1024 }
 0x158   : > { %p842_p12 = scmp.ne.s32.totalorder %s1198_s22, %s841_s10  ;;  %p846_p4 = scmp.lt.s32.totalorder %s1198_s22, %s1251_s3 }
 0x159   : > { %p847_p8 = scmp.lt.s32.totalorder %s845_s9, %s841_s10 }
 0x15a   : > { %p843_p13 = pnand %p842_p12, %p988_p9 }
 0x15b   : > { %p848_p0 = por %p847_p8, %p846_p4 }
 0x15c   : > { %p844_p1 = pneg %p843_p13 }
 0x15e   : > { %p849_p2 = pnand %p848_p0, %p844_p1 }
 0x160   : > { %852 = shalt.err (!%p849_p2)
}
 0x161   : > { %s914_s19 = smov 256   ;;  %s915_s21 = smov 512  }
 0x162   : > { %s916_s29 = smov 16  }
 0x163   : > { %725 = dma.vmem_to_hbm [thread:$0]  (%p988_p9), %s1200_s23, 512, %s1198_s22, %s580_s15, %s914_s19, %s915_s21, %s916_s29  }
 0x164 PF: > { %s611_s30 = sand.u32 1, %s887_s12   ;;  %p1258_p3 = scmp.ge.s32.totalorder %s907_s17, 2 }
 0x165   : > { %s612_s5 = scalar_lea.sflag [#allocation5], %s611_s30 }
 0x166   : > { %p732_p5 = pnand %p1258_p3, %p995_p11 }
 0x168   : > { %p733_p6 = pneg %p732_p5 }
 0x16a   : > { %882 = dma.done.wait (%p733_p6), %s612_s5, 512  }
 0x16b   : > { %884 = vsyncadd (%p733_p6), %s612_s5, 4294966784  ;;  %s19_s17 = sadd.s32 1, %s907_s17   ;;  %s1259_s12 = smov %s891_s13 }
 0x16c   : > { %p16_p7 = scmp.ge.s32.totalorder %s19_s17, 4   ;;  %s1260_s13 = smov %s895_s14 }
 0x16d   : > { %s1261_s14 = smov %s993_s26  ;;  %s1262_s15 = smov %s903_s16 }
 0x16e   : > { %s1263_s16 = smov %s1265_s20  ;;  %18 = sbr.rel (!%p16_p7) target bundleno = 6 (0x6), region = 108 }
 0x173   :  { %617 = vsyncpa [#allocation4], 1 }
 0x174   :  { %619 = vsyncpa [#allocation4 + $0x1], 1 }
 0x175   :  { %620 = vsyncpa [#allocation5], 1 }
 0x176   :  { %622 = vsyncpa [#allocation5 + $0x1], 1 }

</bundles_post_ra>
